<compile_context>
chip_gen: v5e
topology: v5e:2x2
jax: 0.10.0
libtpu: 0.0.40
codegen_flags: <defaults>
</compile_context>

<pallas_src>
import math

import numpy as np
import jax
import jax.numpy as jnp
from jax.experimental import pallas as pl
from jax.experimental.pallas import tpu as pltpu

# ----------------------------- configuration --------------------------------
D_MODEL = 32          # d_model
NHEAD = 4             # nhead
HEAD_DIM = D_MODEL // NHEAD
GLOBAL_LEN = 8        # global_length == seq length (causal mask size)
DIM_FF = 64           # dim_feedforward
BATCH = 2
EPS = 1e-5            # layer_norm_eps


# ------------------------------- kernel --------------------------------------
def encoder_layer_kernel(x_ref, wproj_ref, bproj_ref, w1_ref, b1_ref, w2_ref,
                         vec_ref, maskb_ref, o_ref):
    E, H, hd = D_MODEL, NHEAD, HEAD_DIM
    x = x_ref[...].astype(jnp.float32)                          # (N, E)

    # ---- fused (Q/sqrt(hd)) / K / (V @ Wout) projection: a single MXU matmul ----
    # column layout: [ q heads (H*hd) | k heads (H*hd) | v'_h0 (E) ... v'_h{H-1} (E) ]
    proj = jnp.dot(x.astype(jnp.bfloat16), wproj_ref[...],
                   preferred_element_type=jnp.float32) + bproj_ref[...]

    maskb = maskb_ref[...]                                      # (N, N) additive bias constant
    attn = None
    for h in range(H):                                          # unrolled at trace time
        qh = proj[:, h * hd:(h + 1) * hd].astype(jnp.bfloat16)              # (N, hd), scale folded
        kh = proj[:, E + h * hd:E + (h + 1) * hd].astype(jnp.bfloat16)      # (N, hd)
        vh = proj[:, 2 * E + h * E:2 * E + (h + 1) * E].astype(jnp.bfloat16)  # (N, E), Wout folded
        s = jnp.einsum("qd,kd->qk", qh, kh,
                       preferred_element_type=jnp.float32) + maskb
        m = jnp.max(s, axis=-1, keepdims=True)
        p = jnp.exp(s - m)
        p = p * pl.reciprocal(jnp.sum(p, axis=-1, keepdims=True), approx=True)
        c = jnp.dot(p.astype(jnp.bfloat16), vh, preferred_element_type=jnp.float32)
        attn = c if attn is None else attn + c
    attn = attn + vec_ref[0:1, :]                               # out-proj bias

    # ---- residual + LayerNorm 1 (dropout1 = identity in eval) ----
    h1 = x + attn
    mu = jnp.mean(h1, axis=-1, keepdims=True)
    var = jnp.mean((h1 - mu) ** 2, axis=-1, keepdims=True)
    h1 = (h1 - mu) * jax.lax.rsqrt(var + EPS) * vec_ref[1:2, :] + vec_ref[2:3, :]

    # ---- feed-forward: linear1 -> relu -> linear2 (dropout = identity) ----
    f = jnp.dot(h1.astype(jnp.bfloat16), w1_ref[...],
                preferred_element_type=jnp.float32) + b1_ref[...]
    f = jnp.maximum(f, 0.0)
    f = jnp.dot(f.astype(jnp.bfloat16), w2_ref[...],
                preferred_element_type=jnp.float32) + vec_ref[3:4, :]

    # ---- residual + LayerNorm 2 (dropout2 = identity in eval) ----
    h2 = h1 + f
    mu = jnp.mean(h2, axis=-1, keepdims=True)
    var = jnp.mean((h2 - mu) ** 2, axis=-1, keepdims=True)
    h2 = (h2 - mu) * jax.lax.rsqrt(var + EPS) * vec_ref[4:5, :] + vec_ref[5:6, :]

    o_ref[...] = h2.astype(o_ref.dtype)


# ------------------------ one-off parameter packing ---------------------------
def pack_params(params):
    """Repack the 13 small tensors (run ONCE, outside the per-call jitted path)."""
    (w_in_t, b_in, w_out_t, b_out, g1, bt1, w1_t, b1, w2_t, b2, g2, bt2) = params
    E, H, hd = D_MODEL, NHEAD, HEAD_DIM
    scale = 1.0 / math.sqrt(hd)

    wq = w_in_t[:, :E] * scale                      # fold 1/sqrt(hd) into Q
    wk = w_in_t[:, E:2 * E]
    wv = w_in_t[:, 2 * E:]
    bq = b_in[:, :E] * scale
    bk = b_in[:, E:2 * E]
    bv = b_in[:, 2 * E:]

    # fold the attention out-projection into the per-head V weights / biases
    wv_f = [wv[:, h * hd:(h + 1) * hd] @ w_out_t[h * hd:(h + 1) * hd, :] for h in range(H)]
    bv_f = [bv[:, h * hd:(h + 1) * hd] @ w_out_t[h * hd:(h + 1) * hd, :] for h in range(H)]

    wproj = jnp.concatenate([wq, wk] + wv_f, axis=1).astype(jnp.bfloat16)   # (E, 2E + H*E)
    bproj = jnp.concatenate([bq, bk] + bv_f, axis=1).astype(jnp.float32)    # (1, 2E + H*E)
    w1 = w1_t.astype(jnp.bfloat16)                                          # (E, F)
    b1f = b1.astype(jnp.float32)                                            # (1, F)
    w2 = w2_t.astype(jnp.bfloat16)                                          # (F, E)
    vec = jnp.concatenate([b_out, g1, bt1, b2, g2, bt2], axis=0).astype(jnp.float32)  # (6, E)
    return wproj, bproj, w1, b1f, w2, vec


def build_mask_bias(seq, batch):
    """Block-diagonal (same batch) + causal additive bias for flattened rows r = s*batch + b."""
    n = seq * batch
    r = np.arange(n)
    valid = ((r[:, None] % batch) == (r[None, :] % batch)) & \
            ((r[None, :] // batch) <= (r[:, None] // batch))
    # finite fill (every row has a valid diagonal entry -> no NaN risk)
    return jnp.asarray(np.where(valid, 0.0, -1e30), dtype=jnp.float32)


# ------------------------------ jitted wrapper ---------------------------------
@jax.jit
def my_transformer_encoder_layer(src, wproj, bproj, w1, b1, w2, vec, mask_bias):
    """src: (S, B, E) float32 (PyTorch batch_first=False layout)."""
    S, B, E = src.shape
    # (S,B,E) -> (S*B,E) is contiguity-preserving (no HBM transpose); the
    # per-batch attention structure is restored by the precomputed mask bias.
    x2d = src.reshape(S * B, E)
    vmem = pl.BlockSpec(memory_space=pltpu.MemorySpace.VMEM)
    out2d = pl.pallas_call(
        encoder_layer_kernel,
        out_shape=jax.ShapeDtypeStruct((S * B, E), src.dtype),
        in_specs=[vmem] * 8,
        out_specs=vmem,
        # No grid: single step, all operands resident in VMEM (tens of KiB).
    )(x2d, wproj, bproj, w1, b1, w2, vec, mask_bias)
    return out2d.reshape(S, B, E)


# --------------------------- pure-JAX reference --------------------------------
def reference(src, params):
    (w_in_t, b_in, w_out_t, b_out, g1, bt1, w1_t, b1, w2_t, b2, g2, bt2) = params
    S, B, E = src.shape
    x = jnp.transpose(src, (1, 0, 2)).astype(jnp.float32)       # (B,S,E)
    qkv = x @ w_in_t + b_in[0]                                   # (B,S,3E)
    q, k, v = jnp.split(qkv, 3, axis=-1)

    def split_heads(t):                                          # (B,H,S,hd)
        return jnp.transpose(t.reshape(B, S, NHEAD, HEAD_DIM), (0, 2, 1, 3))

    qh, kh, vh = split_heads(q), split_heads(k), split_heads(v)
    scores = jnp.einsum("bhqd,bhkd->bhqk", qh, kh) / math.sqrt(HEAD_DIM)
    mask = jnp.tril(jnp.ones((S, S), bool))
    scores = jnp.where(mask, scores, -jnp.inf)
    p = jax.nn.softmax(scores, axis=-1)
    attn = jnp.einsum("bhqk,bhkd->bhqd", p, vh)
    attn = jnp.transpose(attn, (0, 2, 1, 3)).reshape(B, S, E)
    attn = attn @ w_out_t + b_out[0]

    def ln(t, g, bta):
        mu = jnp.mean(t, -1, keepdims=True)
        var = jnp.mean((t - mu) ** 2, -1, keepdims=True)
        return (t - mu) * jax.lax.rsqrt(var + EPS) * g[0] + bta[0]

    h1 = ln(x + attn, g1, bt1)
    f = jnp.maximum(h1 @ w1_t + b1[0], 0.0) @ w2_t + b2[0]
    h2 = ln(h1 + f, g2, bt2)
    return jnp.transpose(h2, (1, 0, 2))


# --------------------------------- main ----------------------------------------
if __name__ == "__main__":
    key = jax.random.PRNGKey(0)
    keys = jax.random.split(key, 8)

    # deterministic synthetic parameters (shapes follow the torch module __init__),
    # weights pre-transposed to right-multiply form: y = x @ W^T -> here x @ w_*_t.
    w_in_t = 0.05 * jax.random.normal(keys[0], (D_MODEL, 3 * D_MODEL), jnp.float32)
    b_in = 0.01 * jax.random.normal(keys[1], (1, 3 * D_MODEL), jnp.float32)
    w_out_t = 0.05 * jax.random.normal(keys[2], (D_MODEL, D_MODEL), jnp.float32)
    b_out = 0.01 * jax.random.normal(keys[3], (1, D_MODEL), jnp.float32)
    g1 = jnp.ones((1, D_MODEL), jnp.float32)
    bt1 = jnp.zeros((1, D_MODEL), jnp.float32)
    w1_t = 0.05 * jax.random.normal(keys[4], (D_MODEL, DIM_FF), jnp.float32)
    b1 = 0.01 * jax.random.normal(keys[5], (1, DIM_FF), jnp.float32)
    w2_t = 0.05 * jax.random.normal(keys[6], (DIM_FF, D_MODEL), jnp.float32)
    b2 = 0.01 * jax.random.normal(keys[7], (1, D_MODEL), jnp.float32)
    g2 = jnp.ones((1, D_MODEL), jnp.float32)
    bt2 = jnp.zeros((1, D_MODEL), jnp.float32)
    params = (w_in_t, b_in, w_out_t, b_out, g1, bt1, w1_t, b1, w2_t, b2, g2, bt2)

    # pack ONCE outside the jitted hot path (review item: hoist packing)
    wproj, bproj, w1, b1f, w2, vec = pack_params(params)
    mask_bias = build_mask_bias(GLOBAL_LEN, BATCH)

    # input: (S, B, E) since batch_first=False; S must equal global_length
    src = jax.random.normal(jax.random.PRNGKey(42),
                            (GLOBAL_LEN, BATCH, D_MODEL), jnp.float32)

    out = my_transformer_encoder_layer(src, wproj, bproj, w1, b1f, w2, vec, mask_bias)
    out = jax.block_until_ready(out)

    ref = reference(src, params)
    assert out.shape == src.shape
    # tolerance covers bf16 MXU inputs (f32 accumulation) + approximate-reciprocal softmax
    err = float(jnp.max(jnp.abs(out - ref)))
    assert jnp.allclose(out, ref, atol=1e-2, rtol=1e-2), f"mismatch vs reference (max abs err {err:.3e})"

    print("KERNEL_OK")
</pallas_src>

<mosaic_0001>
module attributes {stable_mosaic.version = 11 : i64} {
  func.func @encoder_layer_kernel(%arg0: memref<16x32xf32, #tpu.memory_space<vmem>>, %arg1: memref<32x192xbf16, #tpu.memory_space<vmem>>, %arg2: memref<1x192xf32, #tpu.memory_space<vmem>>, %arg3: memref<32x64xbf16, #tpu.memory_space<vmem>>, %arg4: memref<1x64xf32, #tpu.memory_space<vmem>>, %arg5: memref<64x32xbf16, #tpu.memory_space<vmem>>, %arg6: memref<6x32xf32, #tpu.memory_space<vmem>>, %arg7: memref<16x16xf32, #tpu.memory_space<vmem>>, %arg8: memref<16x32xf32, #tpu.memory_space<vmem>>) attributes {dimension_semantics = [], scalar_prefetch = 0 : i64, scratch_operands = 0 : i64, tpu.core_type = #tpu.core_type<tc>} {
    %c0 = arith.constant 0 : index
    %c0_0 = arith.constant 0 : index
    %0 = vector.load %arg0[%c0, %c0_0] : memref<16x32xf32, #tpu.memory_space<vmem>>, vector<16x32xf32>
    %1 = arith.truncf %0 : vector<16x32xf32> to vector<16x32xbf16>
    %c0_1 = arith.constant 0 : index
    %c0_2 = arith.constant 0 : index
    %2 = vector.load %arg1[%c0_1, %c0_2] : memref<32x192xbf16, #tpu.memory_space<vmem>>, vector<32x192xbf16>
    %cst = arith.constant dense<0.000000e+00> : vector<16x192xf32>
    %3 = tpu.matmul %1, %2, %cst {dimension_numbers = #tpu.dot_dimension_numbers<[1], [0], [0], [1], [0, 0, 1, 1], [], []>} : vector<16x32xbf16>, vector<32x192xbf16>, vector<16x192xf32> -> vector<16x192xf32>
    %c0_3 = arith.constant 0 : index
    %c0_4 = arith.constant 0 : index
    %4 = vector.load %arg2[%c0_3, %c0_4] : memref<1x192xf32, #tpu.memory_space<vmem>>, vector<1x192xf32>
    %5 = vector.broadcast %4 : vector<1x192xf32> to vector<16x192xf32>
    %6 = arith.addf %3, %5 : vector<16x192xf32>
    %c0_5 = arith.constant 0 : index
    %c0_6 = arith.constant 0 : index
    %7 = vector.load %arg7[%c0_5, %c0_6] : memref<16x16xf32, #tpu.memory_space<vmem>>, vector<16x16xf32>
    %8 = vector.extract_strided_slice %6 {offsets = [0, 0], sizes = [16, 8], strides = [1, 1]} : vector<16x192xf32> to vector<16x8xf32>
    %9 = arith.truncf %8 : vector<16x8xf32> to vector<16x8xbf16>
    %10 = vector.extract_strided_slice %6 {offsets = [0, 32], sizes = [16, 8], strides = [1, 1]} : vector<16x192xf32> to vector<16x8xf32>
    %11 = arith.truncf %10 : vector<16x8xf32> to vector<16x8xbf16>
    %12 = vector.extract_strided_slice %6 {offsets = [0, 64], sizes = [16, 32], strides = [1, 1]} : vector<16x192xf32> to vector<16x32xf32>
    %13 = arith.truncf %12 : vector<16x32xf32> to vector<16x32xbf16>
    "tpu.trace_start"() <{level = 10 : i32, message = "qd,kd->qk"}> : () -> ()
    %cst_7 = arith.constant dense<0.000000e+00> : vector<16x16xf32>
    %14 = tpu.matmul %9, %11, %cst_7 {dimension_numbers = #tpu.dot_dimension_numbers<[1], [1], [0], [0], [0, 0, 1, 0], [], []>} : vector<16x8xbf16>, vector<16x8xbf16>, vector<16x16xf32> -> vector<16x16xf32>
    "tpu.trace_stop"() : () -> ()
    %15 = arith.addf %14, %7 : vector<16x16xf32>
    %cst_8 = arith.constant dense<0xFF800000> : vector<16xf32>
    %16 = vector.multi_reduction <maximumf>, %15, %cst_8 [1] : vector<16x16xf32> to vector<16xf32>
    %17 = vector.shape_cast %16 : vector<16xf32> to vector<16x1xf32>
    %18 = vector.broadcast %17 : vector<16x1xf32> to vector<16x16xf32>
    %19 = arith.subf %15, %18 : vector<16x16xf32>
    %20 = math.exp %19 : vector<16x16xf32>
    %cst_9 = arith.constant dense<0.000000e+00> : vector<16xf32>
    %21 = vector.multi_reduction <add>, %20, %cst_9 [1] : vector<16x16xf32> to vector<16xf32>
    %22 = vector.shape_cast %21 : vector<16xf32> to vector<16x1xf32>
    %23 = tpu.reciprocal %22 {approx = true} : vector<16x1xf32> -> vector<16x1xf32>
    %24 = vector.broadcast %23 : vector<16x1xf32> to vector<16x16xf32>
    %25 = arith.mulf %20, %24 : vector<16x16xf32>
    %26 = arith.truncf %25 : vector<16x16xf32> to vector<16x16xbf16>
    %cst_10 = arith.constant dense<0.000000e+00> : vector<16x32xf32>
    %27 = tpu.matmul %26, %13, %cst_10 {dimension_numbers = #tpu.dot_dimension_numbers<[1], [0], [0], [1], [0, 0, 1, 1], [], []>} : vector<16x16xbf16>, vector<16x32xbf16>, vector<16x32xf32> -> vector<16x32xf32>
    %28 = vector.extract_strided_slice %6 {offsets = [0, 8], sizes = [16, 8], strides = [1, 1]} : vector<16x192xf32> to vector<16x8xf32>
    %29 = arith.truncf %28 : vector<16x8xf32> to vector<16x8xbf16>
    %30 = vector.extract_strided_slice %6 {offsets = [0, 40], sizes = [16, 8], strides = [1, 1]} : vector<16x192xf32> to vector<16x8xf32>
    %31 = arith.truncf %30 : vector<16x8xf32> to vector<16x8xbf16>
    %32 = vector.extract_strided_slice %6 {offsets = [0, 96], sizes = [16, 32], strides = [1, 1]} : vector<16x192xf32> to vector<16x32xf32>
    %33 = arith.truncf %32 : vector<16x32xf32> to vector<16x32xbf16>
    "tpu.trace_start"() <{level = 10 : i32, message = "qd,kd->qk"}> : () -> ()
    %cst_11 = arith.constant dense<0.000000e+00> : vector<16x16xf32>
    %34 = tpu.matmul %29, %31, %cst_11 {dimension_numbers = #tpu.dot_dimension_numbers<[1], [1], [0], [0], [0, 0, 1, 0], [], []>} : vector<16x8xbf16>, vector<16x8xbf16>, vector<16x16xf32> -> vector<16x16xf32>
    "tpu.trace_stop"() : () -> ()
    %35 = arith.addf %34, %7 : vector<16x16xf32>
    %cst_12 = arith.constant dense<0xFF800000> : vector<16xf32>
    %36 = vector.multi_reduction <maximumf>, %35, %cst_12 [1] : vector<16x16xf32> to vector<16xf32>
    %37 = vector.shape_cast %36 : vector<16xf32> to vector<16x1xf32>
    %38 = vector.broadcast %37 : vector<16x1xf32> to vector<16x16xf32>
    %39 = arith.subf %35, %38 : vector<16x16xf32>
    %40 = math.exp %39 : vector<16x16xf32>
    %cst_13 = arith.constant dense<0.000000e+00> : vector<16xf32>
    %41 = vector.multi_reduction <add>, %40, %cst_13 [1] : vector<16x16xf32> to vector<16xf32>
    %42 = vector.shape_cast %41 : vector<16xf32> to vector<16x1xf32>
    %43 = tpu.reciprocal %42 {approx = true} : vector<16x1xf32> -> vector<16x1xf32>
    %44 = vector.broadcast %43 : vector<16x1xf32> to vector<16x16xf32>
    %45 = arith.mulf %40, %44 : vector<16x16xf32>
    %46 = arith.truncf %45 : vector<16x16xf32> to vector<16x16xbf16>
    %cst_14 = arith.constant dense<0.000000e+00> : vector<16x32xf32>
    %47 = tpu.matmul %46, %33, %cst_14 {dimension_numbers = #tpu.dot_dimension_numbers<[1], [0], [0], [1], [0, 0, 1, 1], [], []>} : vector<16x16xbf16>, vector<16x32xbf16>, vector<16x32xf32> -> vector<16x32xf32>
    %48 = arith.addf %27, %47 : vector<16x32xf32>
    %49 = vector.extract_strided_slice %6 {offsets = [0, 16], sizes = [16, 8], strides = [1, 1]} : vector<16x192xf32> to vector<16x8xf32>
    %50 = arith.truncf %49 : vector<16x8xf32> to vector<16x8xbf16>
    %51 = vector.extract_strided_slice %6 {offsets = [0, 48], sizes = [16, 8], strides = [1, 1]} : vector<16x192xf32> to vector<16x8xf32>
    %52 = arith.truncf %51 : vector<16x8xf32> to vector<16x8xbf16>
    %53 = vector.extract_strided_slice %6 {offsets = [0, 128], sizes = [16, 32], strides = [1, 1]} : vector<16x192xf32> to vector<16x32xf32>
    %54 = arith.truncf %53 : vector<16x32xf32> to vector<16x32xbf16>
    "tpu.trace_start"() <{level = 10 : i32, message = "qd,kd->qk"}> : () -> ()
    %cst_15 = arith.constant dense<0.000000e+00> : vector<16x16xf32>
    %55 = tpu.matmul %50, %52, %cst_15 {dimension_numbers = #tpu.dot_dimension_numbers<[1], [1], [0], [0], [0, 0, 1, 0], [], []>} : vector<16x8xbf16>, vector<16x8xbf16>, vector<16x16xf32> -> vector<16x16xf32>
    "tpu.trace_stop"() : () -> ()
    %56 = arith.addf %55, %7 : vector<16x16xf32>
    %cst_16 = arith.constant dense<0xFF800000> : vector<16xf32>
    %57 = vector.multi_reduction <maximumf>, %56, %cst_16 [1] : vector<16x16xf32> to vector<16xf32>
    %58 = vector.shape_cast %57 : vector<16xf32> to vector<16x1xf32>
    %59 = vector.broadcast %58 : vector<16x1xf32> to vector<16x16xf32>
    %60 = arith.subf %56, %59 : vector<16x16xf32>
    %61 = math.exp %60 : vector<16x16xf32>
    %cst_17 = arith.constant dense<0.000000e+00> : vector<16xf32>
    %62 = vector.multi_reduction <add>, %61, %cst_17 [1] : vector<16x16xf32> to vector<16xf32>
    %63 = vector.shape_cast %62 : vector<16xf32> to vector<16x1xf32>
    %64 = tpu.reciprocal %63 {approx = true} : vector<16x1xf32> -> vector<16x1xf32>
    %65 = vector.broadcast %64 : vector<16x1xf32> to vector<16x16xf32>
    %66 = arith.mulf %61, %65 : vector<16x16xf32>
    %67 = arith.truncf %66 : vector<16x16xf32> to vector<16x16xbf16>
    %cst_18 = arith.constant dense<0.000000e+00> : vector<16x32xf32>
    %68 = tpu.matmul %67, %54, %cst_18 {dimension_numbers = #tpu.dot_dimension_numbers<[1], [0], [0], [1], [0, 0, 1, 1], [], []>} : vector<16x16xbf16>, vector<16x32xbf16>, vector<16x32xf32> -> vector<16x32xf32>
    %69 = arith.addf %48, %68 : vector<16x32xf32>
    %70 = vector.extract_strided_slice %6 {offsets = [0, 24], sizes = [16, 8], strides = [1, 1]} : vector<16x192xf32> to vector<16x8xf32>
    %71 = arith.truncf %70 : vector<16x8xf32> to vector<16x8xbf16>
    %72 = vector.extract_strided_slice %6 {offsets = [0, 56], sizes = [16, 8], strides = [1, 1]} : vector<16x192xf32> to vector<16x8xf32>
    %73 = arith.truncf %72 : vector<16x8xf32> to vector<16x8xbf16>
    %74 = vector.extract_strided_slice %6 {offsets = [0, 160], sizes = [16, 32], strides = [1, 1]} : vector<16x192xf32> to vector<16x32xf32>
    %75 = arith.truncf %74 : vector<16x32xf32> to vector<16x32xbf16>
    "tpu.trace_start"() <{level = 10 : i32, message = "qd,kd->qk"}> : () -> ()
    %cst_19 = arith.constant dense<0.000000e+00> : vector<16x16xf32>
    %76 = tpu.matmul %71, %73, %cst_19 {dimension_numbers = #tpu.dot_dimension_numbers<[1], [1], [0], [0], [0, 0, 1, 0], [], []>} : vector<16x8xbf16>, vector<16x8xbf16>, vector<16x16xf32> -> vector<16x16xf32>
    "tpu.trace_stop"() : () -> ()
    %77 = arith.addf %76, %7 : vector<16x16xf32>
    %cst_20 = arith.constant dense<0xFF800000> : vector<16xf32>
    %78 = vector.multi_reduction <maximumf>, %77, %cst_20 [1] : vector<16x16xf32> to vector<16xf32>
    %79 = vector.shape_cast %78 : vector<16xf32> to vector<16x1xf32>
    %80 = vector.broadcast %79 : vector<16x1xf32> to vector<16x16xf32>
    %81 = arith.subf %77, %80 : vector<16x16xf32>
    %82 = math.exp %81 : vector<16x16xf32>
    %cst_21 = arith.constant dense<0.000000e+00> : vector<16xf32>
    %83 = vector.multi_reduction <add>, %82, %cst_21 [1] : vector<16x16xf32> to vector<16xf32>
    %84 = vector.shape_cast %83 : vector<16xf32> to vector<16x1xf32>
    %85 = tpu.reciprocal %84 {approx = true} : vector<16x1xf32> -> vector<16x1xf32>
    %86 = vector.broadcast %85 : vector<16x1xf32> to vector<16x16xf32>
    %87 = arith.mulf %82, %86 : vector<16x16xf32>
    %88 = arith.truncf %87 : vector<16x16xf32> to vector<16x16xbf16>
    %cst_22 = arith.constant dense<0.000000e+00> : vector<16x32xf32>
    %89 = tpu.matmul %88, %75, %cst_22 {dimension_numbers = #tpu.dot_dimension_numbers<[1], [0], [0], [1], [0, 0, 1, 1], [], []>} : vector<16x16xbf16>, vector<16x32xbf16>, vector<16x32xf32> -> vector<16x32xf32>
    %90 = arith.addf %69, %89 : vector<16x32xf32>
    %c0_23 = arith.constant 0 : index
    %c0_24 = arith.constant 0 : index
    %91 = vector.load %arg6[%c0_23, %c0_24] : memref<6x32xf32, #tpu.memory_space<vmem>>, vector<1x32xf32>
    %92 = vector.broadcast %91 : vector<1x32xf32> to vector<16x32xf32>
    %93 = arith.addf %90, %92 : vector<16x32xf32>
    %94 = arith.addf %0, %93 : vector<16x32xf32>
    %cst_25 = arith.constant dense<0.000000e+00> : vector<16xf32>
    %95 = vector.multi_reduction <add>, %94, %cst_25 [1] : vector<16x32xf32> to vector<16xf32>
    %96 = vector.shape_cast %95 : vector<16xf32> to vector<16x1xf32>
    %cst_26 = arith.constant 3.200000e+01 : f32
    %97 = vector.broadcast %cst_26 : f32 to vector<16x1xf32>
    %98 = arith.divf %96, %97 : vector<16x1xf32>
    %99 = vector.broadcast %98 : vector<16x1xf32> to vector<16x32xf32>
    %100 = arith.subf %94, %99 : vector<16x32xf32>
    %101 = arith.mulf %100, %100 : vector<16x32xf32>
    %cst_27 = arith.constant dense<0.000000e+00> : vector<16xf32>
    %102 = vector.multi_reduction <add>, %101, %cst_27 [1] : vector<16x32xf32> to vector<16xf32>
    %103 = vector.shape_cast %102 : vector<16xf32> to vector<16x1xf32>
    %cst_28 = arith.constant 3.200000e+01 : f32
    %104 = vector.broadcast %cst_28 : f32 to vector<16x1xf32>
    %105 = arith.divf %103, %104 : vector<16x1xf32>
    %106 = vector.broadcast %98 : vector<16x1xf32> to vector<16x32xf32>
    %107 = arith.subf %94, %106 : vector<16x32xf32>
    %cst_29 = arith.constant 9.99999974E-6 : f32
    %108 = vector.broadcast %cst_29 : f32 to vector<16x1xf32>
    %109 = arith.addf %105, %108 : vector<16x1xf32>
    %110 = math.rsqrt %109 : vector<16x1xf32>
    %111 = vector.broadcast %110 : vector<16x1xf32> to vector<16x32xf32>
    %112 = arith.mulf %107, %111 : vector<16x32xf32>
    %c1 = arith.constant 1 : index
    %c0_30 = arith.constant 0 : index
    %113 = vector.load %arg6[%c1, %c0_30] : memref<6x32xf32, #tpu.memory_space<vmem>>, vector<1x32xf32>
    %114 = vector.broadcast %113 : vector<1x32xf32> to vector<16x32xf32>
    %115 = arith.mulf %112, %114 : vector<16x32xf32>
    %c2 = arith.constant 2 : index
    %c0_31 = arith.constant 0 : index
    %116 = vector.load %arg6[%c2, %c0_31] : memref<6x32xf32, #tpu.memory_space<vmem>>, vector<1x32xf32>
    %117 = vector.broadcast %116 : vector<1x32xf32> to vector<16x32xf32>
    %118 = arith.addf %115, %117 : vector<16x32xf32>
    %119 = arith.truncf %118 : vector<16x32xf32> to vector<16x32xbf16>
    %c0_32 = arith.constant 0 : index
    %c0_33 = arith.constant 0 : index
    %120 = vector.load %arg3[%c0_32, %c0_33] : memref<32x64xbf16, #tpu.memory_space<vmem>>, vector<32x64xbf16>
    %cst_34 = arith.constant dense<0.000000e+00> : vector<16x64xf32>
    %121 = tpu.matmul %119, %120, %cst_34 {dimension_numbers = #tpu.dot_dimension_numbers<[1], [0], [0], [1], [0, 0, 1, 1], [], []>} : vector<16x32xbf16>, vector<32x64xbf16>, vector<16x64xf32> -> vector<16x64xf32>
    %c0_35 = arith.constant 0 : index
    %c0_36 = arith.constant 0 : index
    %122 = vector.load %arg4[%c0_35, %c0_36] : memref<1x64xf32, #tpu.memory_space<vmem>>, vector<1x64xf32>
    %123 = vector.broadcast %122 : vector<1x64xf32> to vector<16x64xf32>
    %124 = arith.addf %121, %123 : vector<16x64xf32>
    %cst_37 = arith.constant 0.000000e+00 : f32
    %125 = vector.broadcast %cst_37 : f32 to vector<16x64xf32>
    %126 = arith.maximumf %124, %125 : vector<16x64xf32>
    %127 = arith.truncf %126 : vector<16x64xf32> to vector<16x64xbf16>
    %c0_38 = arith.constant 0 : index
    %c0_39 = arith.constant 0 : index
    %128 = vector.load %arg5[%c0_38, %c0_39] : memref<64x32xbf16, #tpu.memory_space<vmem>>, vector<64x32xbf16>
    %cst_40 = arith.constant dense<0.000000e+00> : vector<16x32xf32>
    %129 = tpu.matmul %127, %128, %cst_40 {dimension_numbers = #tpu.dot_dimension_numbers<[1], [0], [0], [1], [0, 0, 1, 1], [], []>} : vector<16x64xbf16>, vector<64x32xbf16>, vector<16x32xf32> -> vector<16x32xf32>
    %c3 = arith.constant 3 : index
    %c0_41 = arith.constant 0 : index
    %130 = vector.load %arg6[%c3, %c0_41] : memref<6x32xf32, #tpu.memory_space<vmem>>, vector<1x32xf32>
    %131 = vector.broadcast %130 : vector<1x32xf32> to vector<16x32xf32>
    %132 = arith.addf %129, %131 : vector<16x32xf32>
    %133 = arith.addf %118, %132 : vector<16x32xf32>
    %cst_42 = arith.constant dense<0.000000e+00> : vector<16xf32>
    %134 = vector.multi_reduction <add>, %133, %cst_42 [1] : vector<16x32xf32> to vector<16xf32>
    %135 = vector.shape_cast %134 : vector<16xf32> to vector<16x1xf32>
    %cst_43 = arith.constant 3.200000e+01 : f32
    %136 = vector.broadcast %cst_43 : f32 to vector<16x1xf32>
    %137 = arith.divf %135, %136 : vector<16x1xf32>
    %138 = vector.broadcast %137 : vector<16x1xf32> to vector<16x32xf32>
    %139 = arith.subf %133, %138 : vector<16x32xf32>
    %140 = arith.mulf %139, %139 : vector<16x32xf32>
    %cst_44 = arith.constant dense<0.000000e+00> : vector<16xf32>
    %141 = vector.multi_reduction <add>, %140, %cst_44 [1] : vector<16x32xf32> to vector<16xf32>
    %142 = vector.shape_cast %141 : vector<16xf32> to vector<16x1xf32>
    %cst_45 = arith.constant 3.200000e+01 : f32
    %143 = vector.broadcast %cst_45 : f32 to vector<16x1xf32>
    %144 = arith.divf %142, %143 : vector<16x1xf32>
    %145 = vector.broadcast %137 : vector<16x1xf32> to vector<16x32xf32>
    %146 = arith.subf %133, %145 : vector<16x32xf32>
    %cst_46 = arith.constant 9.99999974E-6 : f32
    %147 = vector.broadcast %cst_46 : f32 to vector<16x1xf32>
    %148 = arith.addf %144, %147 : vector<16x1xf32>
    %149 = math.rsqrt %148 : vector<16x1xf32>
    %150 = vector.broadcast %149 : vector<16x1xf32> to vector<16x32xf32>
    %151 = arith.mulf %146, %150 : vector<16x32xf32>
    %c4 = arith.constant 4 : index
    %c0_47 = arith.constant 0 : index
    %152 = vector.load %arg6[%c4, %c0_47] : memref<6x32xf32, #tpu.memory_space<vmem>>, vector<1x32xf32>
    %153 = vector.broadcast %152 : vector<1x32xf32> to vector<16x32xf32>
    %154 = arith.mulf %151, %153 : vector<16x32xf32>
    %c5 = arith.constant 5 : index
    %c0_48 = arith.constant 0 : index
    %155 = vector.load %arg6[%c5, %c0_48] : memref<6x32xf32, #tpu.memory_space<vmem>>, vector<1x32xf32>
    %156 = vector.broadcast %155 : vector<1x32xf32> to vector<16x32xf32>
    %157 = arith.addf %154, %156 : vector<16x32xf32>
    %c0_49 = arith.constant 0 : index
    %c0_50 = arith.constant 0 : index
    %158 = vector.load %arg8[%c0_49, %c0_50] : memref<16x32xf32, #tpu.memory_space<vmem>>, vector<16x32xf32>
    tpu.vector_store %arg8[%c0_49, %c0_50], %157 {strides = array<i32>} : memref<16x32xf32, #tpu.memory_space<vmem>>, vector<16x32xf32>,
    return
  }
}

</mosaic_0001>

<bundles_post_ra>
// kernel: my_transformer_encoder_layer.1
= control target key start
LH: loop header
LB: loop body
LE: loop exit
PB: predicated region body
PF: predicated region fallthrough
CT: control target
= control target key end

     0   :  { %13 = vsyncpa [#allocation3], 0  ;;  %s1118_s0 = inlined_call_operand.vmem [shape: f32[16,32], index: 0, kind: input, shape index: {}]   ;;  %s1119_s1 = inlined_call_operand.vmem [shape: bf16[32,192], index: 1, kind: input, shape index: {}]   ;;  %s1120_s2 = inlined_call_operand.vmem [shape: f32[1,192], index: 2, kind: input, shape index: {}]   ;;  %s1121_s3 = inlined_call_operand.hbm [shape: bf16[32,64], index: 3, kind: input, shape index: {}]   ;;  %s1122_s4 = inlined_call_operand.vmem [shape: f32[1,64], index: 4, kind: input, shape index: {}]   ;;  %s1123_s5 = inlined_call_operand.vmem [shape: bf16[64,32], index: 5, kind: input, shape index: {}]   ;;  %s1124_s6 = inlined_call_operand.hbm [shape: f32[6,32], index: 6, kind: input, shape index: {}]   ;;  %s1125_s7 = inlined_call_operand.hbm [shape: f32[16,16], index: 7, kind: input, shape index: {}]   ;;  %s1126_s8 = inlined_call_operand.hbm [shape: f32[16,32], index: 8, kind: output, shape index: {}]  }
   0x1   :  { %14 = vsyncpa [#allocation6], 0  ;;  %s44_s29 = sshll.u32 %s1124_s6, 4  ;;  %s45_s29 = int_to_ptr.hbm [resolvable:$true] %s44_s29 }
   0x2   :  { %15 = vsyncpa [#allocation4], 0  ;;  %s880_s30 = smov [#allocation5]   ;;  %s26_s12 = sshll.u32 %s1121_s3, 4  ;;  %s27_s12 = int_to_ptr.hbm [resolvable:$true] %s26_s12 }
   0x3   :  { %s46_s9 = sshll.u32 %s880_s30, 4  ;;  %s881_s13 = smov [#allocation2]   ;;  %s47_s9 = int_to_ptr.vmem [resolvable:$true] %s46_s9 }
   0x4   :  { %49 = dma.hbm_to_vmem [thread:$0]  %s45_s29, 128, %s47_s9, [#allocation6]  }
   0x5   :  { %s28_s14 = sshll.u32 %s881_s13, 4  ;;  %s882_s15 = smov 64   ;;  %s29_s14 = int_to_ptr.vmem [resolvable:$true] %s28_s14 }
   0x6   :  { %s883_s16 = smov 4   ;;  %s54_s18 = sshll.u32 %s1125_s7, 4  ;;  %s55_s18 = int_to_ptr.hbm [resolvable:$true] %s54_s18 }
   0x7   :  { %34 = dma.hbm_to_vmem [thread:$0]  %s27_s12, 256, %s29_s14, [#allocation3], %s882_s15, %s882_s15, %s883_s16  }
   0x8   :  { %s884_s19 = smov [#allocation7]   ;;  %s885_s21 = smov 128  }
   0x9   :  { %s56_s20 = sshll.u32 %s884_s19, 4  ;;  %s886_s3 = smov 8   ;;  %s57_s20 = int_to_ptr.vmem [resolvable:$true] %s56_s20 }
   0xa   :  { %62 = dma.hbm_to_vmem [thread:$0]  %s55_s18, 256, %s57_s20, [#allocation6], %s885_s21, %s885_s21, %s886_s3  }
   0xb   :  { %874 = dma.done.wait [#allocation3], 256  }
   0xc   :  { %875 = vsyncadd [#allocation3], 4294967040 }
   0xd   :  { %876 = dma.done.wait [#allocation6], 384  }
   0xe   :  { %877 = vsyncadd [#allocation6], 4294966912  ;;  %v660_v0 = vld [vmem:[%s1119_s1 + $0x10] sm:$0xf]  ;;  %v705_v1 = vld [vmem:[%s1119_s1 + $0x14] sm:$0xf0] }
   0xf   :  { %v652_v2 = vld [vmem:[%s1119_s1] sm:$0xf]  ;;  %v661_v3 = vor.u32 %v705_v1, %v660_v0  ;;  %v703_v4 = vld [vmem:[%s1119_s1 + $0x4] sm:$0xf0]  ;;  %vm109_vm0 = vcmask 261120   ;;  %s888_s13 = smov 88  }
  0x10   :  { %v971_v5 = vld [vmem:[%s1118_s0] sm:$0xff]  ;;  %v653_v6 = vor.u32 %v703_v4, %v652_v2  ;;  %v976_v7 = vld [vmem:[%s1118_s0 + $0x8] sm:$0xff]  ;;  %s887_s0 = smov 96   ;;  %s889_s14 = smov 120   ;;  %vm147_vm1 = vcmask 64512   ;;  %v1001_v21 = vld [vmem:[#allocation7] sm:$0xff] }
  0x11   :  { %119 = vmatpush.bf16.msra.mxu0 %v661_v3  ;;  %v980_v8 = vpack.c.bf16 %v976_v7, %v971_v5  ;;  %v987_v10 = vld [vmem:[%s1120_s2] sm:$0x3]  ;;  %vm168_vm2 = vcmask 130048   ;;  %s890_s2 = smov 80   ;;  %s891_s16 = smov 32   ;;  %vm556_vm10 = vcmask 523264  }
  0x12   :  { %v85_v11 = vperm.slane %v987_v10, 0  ;;  %v1005_v25 = vld [vmem:[#allocation7 + $0x8] sm:$0xff]  ;;  %s892_s6 = smov 112   ;;  %s893_s17 = smov 104  }
  0x13   :  { %s894_s18 = smov 72  }
  0x15   :  { %120 = vmatpush.bf16.msra.mxu0 %v653_v6 }
  0x18   :  { %666 = vmatmul.msk.bf16.vlgmr.msra.gmra.mxu0 %vm109_vm0, %v980_v8 }
  0x95   :  { %v122_v9 = vpop.f32.mrf.mxu0 }
  0x96   :  { %v123_v13 = vadd.f32 %v122_v9, %v85_v11 }
  0x9d   :  { %v124_v12 = vpop.f32.mrf.mxu0 }
  0x9e   :  { %v125_v14 = vadd.f32 %v124_v12, %v85_v11 }
  0xa0   :  { %v990_v15 = vpack.c.bf16 %v125_v14, %v123_v13 }
  0xa2   :  { %145 = vrot.lane.b32.xlu2 %v990_v15, %s887_s0  ;;  %194 = vrot.lane.b32.xlu0 %v990_v15, %s888_s13 }
  0xaa   :  { %192 = vrot.lane.b32.xlu0 %v990_v15, %s889_s14  ;;  %s636_s14 = sshll.u32 %s1126_s8, 4  ;;  %s637_s14 = int_to_ptr.hbm [resolvable:$true] %s636_s14 }
  0xfc   :  { %v146_v16 = vpop.permute.xlu2 %145 }
  0xfd   :  { %v152_v17 = vsel %vm147_vm1, %v146_v16, 0  ;;  %v704_v16 = vld [vmem:[%s1119_s1 + $0x14] sm:$0xf] }
  0xfe   :  { %161 = vmatpush.bf16.xpose.msra.mxu2 %v152_v17  ;;  %v662_v17 = vld [vmem:[%s1119_s1 + $0x18] sm:$0xf0] }
 0x105   :  { %668 = vmatmul.msk.bf16.vlgmr.msra.gmra.mxu2 %vm147_vm1, %v990_v15 }
 0x114   :  { %v195_v18 = vpop.permute.xlu0 %194 }
 0x115   :  { %v200_v19 = vsel %vm147_vm1, %v195_v18, 0  ;;  %v665_v18 = vor.u32 %v704_v16, %v662_v17 }
 0x116   :  { %209 = vmatpush.bf16.xpose.msra.mxu3 %v200_v19  ;;  %v702_v19 = vld [vmem:[%s1119_s1 + $0x4] sm:$0xf] }
 0x117   :  { %133 = vmatpush.bf16.msra.mxu1 %v665_v18 }
 0x11c   :  { %v193_v20 = vpop.permute.xlu0 %192 }
 0x11d   :  { %669 = vmatmul.msk.bf16.vlgmr.msra.gmra.mxu3 %vm147_vm1, %v193_v20  ;;  %v654_v20 = vld [vmem:[%s1119_s1 + $0x8] sm:$0xf0] }
 0x188   :  { %v163_v29 = vpop.f32.mrf.mxu2 }
 0x189   :  { %v164_v43 = vadd.f32 %v163_v29, %v1001_v21 }
 0x18b   :  { %v169_v44 = vsel %vm168_vm2, %v164_v43, -inf }
 0x190   :  { %v165_v30 = vpop.f32.mrf.mxu2 }
 0x191   :  { %v166_v31 = vadd.f32 %v165_v30, %v1005_v25 }
 0x193   :  { %v172_v32 = vsel %vm168_vm2, %v166_v31, -inf }
 0x1a0   :  { %v211_v22 = vpop.f32.mrf.mxu3 }
 0x1a1   :  { %v212_v23 = vadd.f32 %v211_v22, %v1001_v21  ;;  %v657_v22 = vor.u32 %v702_v19, %v654_v20 }
 0x1a3   :  { %v216_v24 = vsel %vm168_vm2, %v212_v23, -inf  ;;  %134 = vmatpush.bf16.msra.mxu1 %v657_v22 }
 0x1a4   :  { %217 = vmax.xlane.f32.xlu1 %v216_v24 }
 0x1a6   :  { %667 = vmatmul.msk.bf16.vlgmr.msra.gmra.mxu1 %vm109_vm0, %v980_v8 }
 0x1a8   :  { %v213_v26 = vpop.f32.mrf.mxu3 }
 0x1a9   :  { %v214_v27 = vadd.f32 %v213_v26, %v1005_v25 }
 0x1ab   :  { %v219_v28 = vsel %vm168_vm2, %v214_v27, -inf }
 0x1ac   :  { %220 = vmax.xlane.f32.xlu1 %v219_v28 }
 0x1c5   :  { %282 = vrot.lane.b32.xlu1 %v990_v15, %s890_s2 }
 0x1cd   :  { %239 = vrot.lane.b32.xlu1 %v990_v15, %s891_s16 }
 0x1d5   :  { %280 = vrot.lane.b32.xlu1 %v990_v15, %s892_s6 }
 0x1dd   :  { %346 = vrot.lane.b32.xlu1 %v990_v15, %s893_s17 }
 0x207   :  { %173 = vmax.xlane.f32.xlu1 %v172_v32 }
 0x217   :  { %v218_v33 = vpop.xlane.xlu1 %217 }
 0x218   :  { %v222_v34 = vsub.f32 %v212_v23, %v218_v33 }
 0x21a   :  { %v224_v35 = vmul.f32 1.442695, %v222_v34 }
 0x21c   :  { %736 = vpow2.f32 %v224_v35 }
 0x21f   :  { %v221_v36 = vpop.xlane.xlu1 %220 }
 0x220   :  { %v223_v37 = vsub.f32 %v214_v27, %v221_v36 }
 0x222   :  { %v737_v38 = vpop.eup %736  ;;  %v226_v39 = vmul.f32 1.442695, %v223_v37 }
 0x223   :  { %v228_v40 = vsel %vm168_vm2, %v737_v38, 0.0 }
 0x224   :  { %738 = vpow2.f32 %v226_v39  ;;  %229 = vadd.xlane.f32.xlu2 %v228_v40  ;;  %v136_v40 = vpop.f32.mrf.mxu1 }
 0x22a   :  { %v739_v41 = vpop.eup %738 }
 0x22b   :  { %v231_v42 = vsel %vm168_vm2, %v739_v41, 0.0 }
 0x22c   :  { %232 = vadd.xlane.f32.xlu0 %v231_v42  ;;  %v86_v42 = vperm.slane %v987_v10, 1 }
 0x234   :  { %170 = vmax.xlane.f32.xlu0 %v169_v44  ;;  %v138_v44 = vpop.f32.mrf.mxu1 }
 0x237   :  { %v283_v45 = vpop.permute.xlu1 %282 }
 0x238   :  { %v288_v46 = vsel %vm147_vm1, %v283_v45, 0 }
 0x239   :  { %297 = vmatpush.bf16.xpose.msrb.mxu2 %v288_v46  ;;  %v139_v46 = vadd.f32 %v138_v44, %v86_v42 }
 0x23c   :  { %348 = vrot.lane.b32.xlu2 %v990_v15, %s894_s18 }
 0x23f   :  { %v240_v47 = vpop.permute.xlu1 %239 }
 0x240   :  { %252 = vmatpush.bf16.msrb.mxu0 %v240_v47 }
 0x247   :  { %v281_v48 = vpop.permute.xlu1 %280 }
 0x248   :  { %672 = vmatmul.msk.bf16.vlgmr.msrb.gmra.mxu2 %vm147_vm1, %v281_v48 }
 0x24f   :  { %v347_v58 = vpop.permute.xlu1 %346 }
 0x27a   :  { %v174_v62 = vpop.xlane.xlu1 %173 }
 0x27b   :  { %v176_v1 = vsub.f32 %v166_v31, %v174_v62 }
 0x27d   :  { %v179_v3 = vmul.f32 1.442695, %v176_v1 }
 0x297   :  { %v230_v49 = vpop.xlane.xlu2 %229 }
 0x298   :  { %740 = vrcp.f32 %v230_v49 }
 0x29e   :  { %v741_v53 = vpop.eup %740 }
 0x29f   :  { %v349_v50 = vpop.permute.xlu2 %348  ;;  %v233_v51 = vpop.xlane.xlu0 %232  ;;  %v236_v55 = vmul.f32 %v741_v53, %v737_v38 }
 0x2a0   :  { %v354_v52 = vsel %vm147_vm1, %v349_v50, 0  ;;  %742 = vrcp.f32 %v233_v51 }
 0x2a1   :  { %363 = vmatpush.bf16.xpose.msra.mxu0 %v354_v52 }
 0x2a6   :  { %v743_v54 = vpop.eup %742 }
 0x2a7   :  { %v237_v56 = vmul.f32 %v743_v54, %v739_v41  ;;  %v171_v59 = vpop.xlane.xlu0 %170 }
 0x2a8   :  { %v175_v60 = vsub.f32 %v164_v43, %v171_v59  ;;  %v137_v43 = vadd.f32 %v136_v40, %v86_v42 }
 0x2a9   :  { %v238_v57 = vpack.c.bf16 %v237_v56, %v236_v55 }
 0x2aa   :  { %v177_v61 = vmul.f32 1.442695, %v175_v60  ;;  %v279_v48 = vpack.c.bf16 %v139_v46, %v137_v43 }
 0x2ab   :  { %670 = vmatmul.msk.bf16.vlgmr.msrb.gmra.mxu0 %vm168_vm2, %v238_v57 }
 0x2ac   :  { %744 = vpow2.f32 %v177_v61  ;;  %337 = vmatpush.bf16.msrb.mxu3 %v279_v48 }
 0x2ad   :  { %746 = vpow2.f32 %v179_v3 }
 0x2b2   :  { %v1027_v4 = vpop.eup %744 }
 0x2b3   :  { %v181_v12 = vsel %vm168_vm2, %v1027_v4, 0.0  ;;  %v1033_v13 = vpop.eup %746 }
 0x2b4   :  { %v184_v14 = vsel %vm168_vm2, %v1033_v13, 0.0 }
 0x2bb   :  { %674 = vmatmul.msk.bf16.vlgmr.msra.gmra.mxu0 %vm147_vm1, %v347_v58 }
 0x2cb   :  { %v299_v63 = vpop.f32.mrf.mxu2 }
 0x2cc   :  { %v300_v0 = vadd.f32 %v299_v63, %v1001_v21 }
 0x2ce   :  { %v304_v2 = vsel %vm168_vm2, %v300_v0, -inf }
 0x2cf   :  { %305 = vmax.xlane.f32.xlu0 %v304_v2 }
 0x2d3   :  { %v301_v6 = vpop.f32.mrf.mxu2 }
 0x2d4   :  { %v302_v9 = vadd.f32 %v301_v6, %v1005_v25 }
 0x2d6   :  { %v307_v11 = vsel %vm168_vm2, %v302_v9, -inf }
 0x2d7   :  { %308 = vmax.xlane.f32.xlu2 %v307_v11  ;;  %182 = vadd.xlane.f32.xlu0 %v181_v12 }
 0x2df   :  { %185 = vadd.xlane.f32.xlu0 %v184_v14 }
 0x328   :  { %v1049_v23 = vpop.f32.mrf.mxu0 }
 0x330   :  { %v1053_v24 = vpop.f32.mrf.mxu0 }
 0x338   :  { %v365_v26 = vpop.f32.mrf.mxu0 }
 0x339   :  { %v366_v27 = vadd.f32 %v365_v26, %v1001_v21  ;;  %v729_v26 = vld [vmem:[#allocation5] ss:$0 sm:$0xff] }
 0x33b   :  { %v370_v28 = vsel %vm168_vm2, %v366_v27, -inf }
 0x33c   :  { %371 = vmax.xlane.f32.xlu0 %v370_v28 }
 0x340   :  { %v367_v29 = vpop.f32.mrf.mxu0 }
 0x341   :  { %v368_v30 = vadd.f32 %v367_v29, %v1005_v25 }
 0x342   :  { %v306_v31 = vpop.xlane.xlu0 %305 }
 0x343   :  { %v310_v32 = vsub.f32 %v300_v0, %v306_v31  ;;  %v373_v33 = vsel %vm168_vm2, %v368_v30, -inf }
 0x344   :  { %374 = vmax.xlane.f32.xlu0 %v373_v33 }
 0x345   :  { %v312_v34 = vmul.f32 1.442695, %v310_v32 }
 0x347   :  { %748 = vpow2.f32 %v312_v34 }
 0x34a   :  { %v309_v35 = vpop.xlane.xlu2 %308  ;;  %v183_v25 = vpop.xlane.xlu0 %182 }
 0x34b   :  { %v311_v8 = vsub.f32 %v302_v9, %v309_v35 }
 0x34d   :  { %v749_v36 = vpop.eup %748  ;;  %v314_v37 = vmul.f32 1.442695, %v311_v8 }
 0x34e   :  { %v316_v38 = vsel %vm168_vm2, %v749_v36, 0.0 }
 0x34f   :  { %750 = vpow2.f32 %v314_v37  ;;  %317 = vadd.xlane.f32.xlu0 %v316_v38  ;;  %v895_v38 = vmov 32.0  }
 0x352   :  { %v186_v41 = vpop.xlane.xlu0 %185 }
 0x355   :  { %v751_v21 = vpop.eup %750 }
 0x356   :  { %v319_v39 = vsel %vm168_vm2, %v751_v21, 0.0 }
 0x357   :  { %320 = vadd.xlane.f32.xlu1 %v319_v39 }
 0x363   :  { %259 = vrot.lane.b32.xlu0 %v990_v15, %s882_s15 }
 0x3af   :  { %v372_v45 = vpop.xlane.xlu0 %371 }
 0x3b0   :  { %v376_v47 = vsub.f32 %v366_v27, %v372_v45 }
 0x3b2   :  { %v378_v49 = vmul.f32 1.442695, %v376_v47 }
 0x3b4   :  { %752 = vpow2.f32 %v378_v49 }
 0x3b7   :  { %v375_v50 = vpop.xlane.xlu0 %374 }
 0x3b8   :  { %v377_v51 = vsub.f32 %v368_v30, %v375_v50  ;;  %v707_v50 = vld [vmem:[#allocation2 + $0x8] sm:$0xff] }
 0x3b9   :  { %511 = vmatpush.bf16.msra.mxu2 %v707_v50 }
 0x3ba   :  { %v753_v52 = vpop.eup %752  ;;  %v380_v53 = vmul.f32 1.442695, %v377_v51 }
 0x3bb   :  { %v382_v15 = vsel %vm168_vm2, %v753_v52, 0.0 }
 0x3bc   :  { %754 = vpow2.f32 %v380_v53  ;;  %383 = vadd.xlane.f32.xlu2 %v382_v15  ;;  %v706_v53 = vld [vmem:[#allocation2] sm:$0xff] }
 0x3bd   :  { %512 = vmatpush.bf16.msra.mxu2 %v706_v53 }
 0x3c2   :  { %v755_v54 = vpop.eup %754  ;;  %v318_v55 = vpop.xlane.xlu0 %317 }
 0x3c3   :  { %v385_v10 = vsel %vm168_vm2, %v755_v54, 0.0  ;;  %756 = vrcp.f32 %v318_v55 }
 0x3c4   :  { %386 = vadd.xlane.f32.xlu1 %v385_v10  ;;  %758 = vrcp.f32 %v186_v41 }
 0x3c9   :  { %v757_v57 = vpop.eup %756 }
 0x3ca   :  { %v321_v56 = vpop.xlane.xlu1 %320  ;;  %v759_v58 = vpop.eup %758  ;;  %v324_v61 = vmul.f32 %v757_v57, %v749_v36 }
 0x3cb   :  { %760 = vrcp.f32 %v321_v56  ;;  %v190_v63 = vmul.f32 %v759_v58, %v1033_v13 }
 0x3cc   :  { %762 = vrcp.f32 %v183_v25 }
 0x3d1   :  { %v761_v59 = vpop.eup %760 }
 0x3d2   :  { %v763_v60 = vpop.eup %762  ;;  %v325_v62 = vmul.f32 %v761_v59, %v751_v21 }
 0x3d3   :  { %v189_v1 = vmul.f32 %v763_v60, %v1027_v4 }
 0x3d4   :  { %394 = vrot.lane.b32.xlu2 %v279_v48, %s887_s0  ;;  %v326_v0 = vpack.c.bf16 %v325_v62, %v324_v61 }
 0x3d5   :  { %v260_v2 = vpop.permute.xlu0 %259  ;;  %v191_v3 = vpack.c.bf16 %v190_v63, %v189_v1 }
 0x3d6   :  { %272 = vmatpush.bf16.msrb.mxu1 %v260_v2  ;;  %673 = vmatmul.msk.bf16.vlgmr.msrb.gmra.mxu3 %vm168_vm2, %v326_v0 }
 0x3d9   :  { %671 = vmatmul.msk.bf16.vlgmr.msrb.gmra.mxu1 %vm168_vm2, %v191_v3 }
 0x42f   :  { %v384_v6 = vpop.xlane.xlu2 %383 }
 0x430   :  { %764 = vrcp.f32 %v384_v6  ;;  %v730_v6 = vld [vmem:[#allocation5 + $0x1] ss:$0 sm:$0xff] }
 0x436   :  { %v765_v12 = vpop.eup %764 }
 0x437   :  { %v395_v9 = vpop.permute.xlu2 %394  ;;  %v387_v11 = vpop.xlane.xlu1 %386  ;;  %v390_v14 = vmul.f32 %v765_v12, %v753_v52 }
 0x438   :  { %766 = vrcp.f32 %v387_v11  ;;  %407 = vmatpush.bf16.msra.mxu1 %v395_v9 }
 0x439   :  { %768 = vrcp.f32 %v895_v38 }
 0x43e   :  { %v767_v13 = vpop.eup %766 }
 0x43f   :  { %v391_v16 = vmul.f32 %v767_v13, %v755_v54  ;;  %v769_v21 = vpop.eup %768  ;;  %v731_v13 = vld [vmem:[#allocation5 + $0x2] ss:$0 sm:$0xff] }
 0x440   :  { %vm433_vm3 = vweird.f32 %v769_v21 }
 0x441   :  { %v392_v17 = vpack.c.bf16 %v391_v16, %v390_v14 }
 0x443   :  { %675 = vmatmul.msk.bf16.vlgmr.msra.gmra.mxu1 %vm168_vm2, %v392_v17 }
 0x456   :  { %v274_v4 = vpop.f32.mrf.mxu1 }
 0x457   :  { %v275_v20 = vadd.f32 %v274_v4, %v1049_v23 }
 0x459   :  { %v339_v19 = vpop.f32.mrf.mxu3 }
 0x45a   :  { %v344_v22 = vadd.f32 %v339_v19, %v275_v20  ;;  %v711_v20 = vld [vmem:[%s1123_s5 + $0x18] sm:$0xff] }
 0x45b   :  { %564 = vmatpush.bf16.msra.mxu3 %v711_v20 }
 0x45e   :  { %v276_v18 = vpop.f32.mrf.mxu1 }
 0x45f   :  { %v277_v29 = vadd.f32 %v276_v18, %v1053_v24  ;;  %v429_v24 = vmul.f32 32.0, %v769_v21 }
 0x461   :  { %v341_v31 = vpop.f32.mrf.mxu3  ;;  %v430_v39 = vsub.f32 1.0, %v429_v24 }
 0x462   :  { %v345_v33 = vadd.f32 %v341_v31, %v277_v29  ;;  %v732_v29 = vld [vmem:[%s1122_s4] ss:$0 sm:$0xff]  ;;  %s896_s4 = smov [#allocation8]  }
 0x463   :  { %v431_v25 = vmul.f32 %v769_v21, %v430_v39 }
 0x465   :  { %v432_v40 = vadd.f32 %v769_v21, %v431_v25 }
 0x4c0   :  { %v409_v27 = vpop.f32.mrf.mxu1 }
 0x4c1   :  { %v414_v28 = vadd.f32 %v409_v27, %v344_v22  ;;  %v710_v22 = vld [vmem:[%s1123_s5 + $0x10] sm:$0xff]  ;;  %v708_v27 = vld [vmem:[%s1123_s5] sm:$0xff] }
 0x4c2   :  { %565 = vmatpush.bf16.msra.mxu3 %v710_v22 }
 0x4c3   :  { %v418_v30 = vadd.f32 %v729_v26, %v414_v28 }
 0x4c5   :  { %v420_v32 = vadd.f32 %v418_v30, %v971_v5  ;;  %v1078_v5 = vsel %vm433_vm3, %v769_v21, %v432_v40 }
 0x4c7   :  { %v422_v34 = vsel %vm109_vm0, %v420_v32, 0.0 }
 0x4c8   :  { %423 = vadd.xlane.f32.xlu1 %v422_v34  ;;  %v411_v35 = vpop.f32.mrf.mxu1 }
 0x4c9   :  { %v415_v8 = vadd.f32 %v411_v35, %v345_v33 }
 0x4cb   :  { %v419_v36 = vadd.f32 %v729_v26, %v415_v8  ;;  %v709_v26 = vld [vmem:[%s1123_s5 + $0x8] sm:$0xff]  ;;  %v733_v8 = vld [vmem:[#allocation5 + $0x3] ss:$0 sm:$0xff]  ;;  %s634_s5 = sshll.u32 %s896_s4, 4  ;;  %s635_s5 = int_to_ptr.vmem [resolvable:$true] %s634_s5 }
 0x4cc   :  { %566 = vmatpush.bf16.msra.mxu3 %v709_v26 }
 0x4cd   :  { %v421_v37 = vadd.f32 %v419_v36, %v976_v7 }
 0x4cf   :  { %v425_v23 = vsel %vm109_vm0, %v421_v37, 0.0 }
 0x4d0   :  { %426 = vadd.xlane.f32.xlu1 %v425_v23  ;;  %567 = vmatpush.bf16.msra.mxu3 %v708_v27 }
 0x53b   :  { %v424_v41 = vpop.xlane.xlu1 %423 }
 0x53c   :  { %v435_v42 = vmul.f32 %v1078_v5, %v424_v41 }
 0x53e   :  { %v437_v43 = vsub.f32 %v420_v32, %v435_v42 }
 0x540   :  { %v439_v44 = vmul.f32 %v437_v43, %v437_v43 }
 0x542   :  { %v441_v7 = vsel %vm109_vm0, %v439_v44, 0.0 }
 0x543   :  { %442 = vadd.xlane.f32.xlu0 %v441_v7  ;;  %v427_v45 = vpop.xlane.xlu1 %426 }
 0x544   :  { %v436_v46 = vmul.f32 %v1078_v5, %v427_v45 }
 0x546   :  { %v438_v47 = vsub.f32 %v421_v37, %v436_v46 }
 0x548   :  { %v440_v48 = vmul.f32 %v438_v47, %v438_v47 }
 0x54a   :  { %v444_v49 = vsel %vm109_vm0, %v440_v48, 0.0 }
 0x54b   :  { %445 = vadd.xlane.f32.xlu1 %v444_v49 }
 0x5b6   :  { %v443_v51 = vpop.xlane.xlu0 %442 }
 0x5b7   :  { %v447_v52 = vmul.f32 %v443_v51, %v1078_v5 }
 0x5b9   :  { %v449_v15 = vadd.f32 1e-05, %v447_v52 }
 0x5bb   :  { %770 = vrsqrt.f32 %v449_v15  ;;  %vm457_vm5 = vweird.f32 %v449_v15 }
 0x5be   :  { %v446_v54 = vpop.xlane.xlu1 %445 }
 0x5bf   :  { %v448_v10 = vmul.f32 %v446_v54, %v1078_v5 }
 0x5c1   :  { %v771_v55 = vpop.eup %770  ;;  %v450_v56 = vadd.f32 1e-05, %v448_v10 }
 0x5c2   :  { %v452_v57 = vmul.f32 %v771_v55, %v449_v15  ;;  %vm458_vm4 = vweird.f32 %v771_v55 }
 0x5c3   :  { %772 = vrsqrt.f32 %v450_v56  ;;  %vm459_vm6 = vmor %vm457_vm5, %vm458_vm4  ;;  %vm467_vm8 = vweird.f32 %v450_v56 }
 0x5c4   :  { %v453_v58 = vmul.f32 %v771_v55, %v452_v57 }
 0x5c6   :  { %v454_v59 = vmul.f32 0.5, %v453_v58 }
 0x5c8   :  { %v455_v60 = vsub.f32 1.5, %v454_v59 }
 0x5c9   :  { %v773_v61 = vpop.eup %772 }
 0x5ca   :  { %v456_v62 = vmul.f32 %v771_v55, %v455_v60  ;;  %v462_v63 = vmul.f32 %v773_v61, %v450_v56  ;;  %vm468_vm7 = vweird.f32 %v773_v61 }
 0x5cb   :  { %vm469_vm9 = vmor %vm467_vm8, %vm468_vm7 }
 0x5cc   :  { %v463_v0 = vmul.f32 %v773_v61, %v462_v63  ;;  %v460_v1 = vsel %vm459_vm6, %v771_v55, %v456_v62 }
 0x5cd   :  { %v471_v9 = vmul.f32 %v460_v1, %v437_v43  ;;  %v735_v1 = vld [vmem:[#allocation5 + $0x5] ss:$0 sm:$0xff] }
 0x5ce   :  { %v464_v2 = vmul.f32 0.5, %v463_v0 }
 0x5cf   :  { %v475_v14 = vmul.f32 %v730_v6, %v471_v9 }
 0x5d0   :  { %v465_v3 = vsub.f32 1.5, %v464_v2 }
 0x5d1   :  { %v479_v4 = vadd.f32 %v731_v13, %v475_v14 }
 0x5d2   :  { %v466_v11 = vmul.f32 %v773_v61, %v465_v3 }
 0x5d4   :  { %v470_v12 = vsel %vm469_vm9, %v773_v61, %v466_v11  ;;  %v734_v61 = vld [vmem:[#allocation5 + $0x4] ss:$0 sm:$0xff] }
 0x5d5   :  { %v472_v16 = vmul.f32 %v470_v12, %v438_v47 }
 0x5d7   :  { %v476_v17 = vmul.f32 %v730_v6, %v472_v16 }
 0x5d9   :  { %v480_v18 = vadd.f32 %v731_v13, %v476_v17 }
 0x5db   :  { %v481_v19 = vpack.c.bf16 %v480_v18, %v479_v4 }
 0x5dd   :  { %684 = vmatmul.msk.bf16.vlgmr.msra.gmra.mxu2 %vm109_vm0, %v481_v19 }
 0x660   :  { %v514_v28 = vpop.f32.mrf.mxu2 }
 0x661   :  { %v515_v30 = vadd.f32 %v732_v29, %v514_v28 }
 0x663   :  { %v519_v33 = vmax.f32 %v515_v30, 0.0 }
 0x668   :  { %v516_v31 = vpop.f32.mrf.mxu2 }
 0x669   :  { %v517_v32 = vadd.f32 %v732_v29, %v516_v31 }
 0x66b   :  { %v520_v34 = vmax.f32 %v517_v32, 0.0 }
 0x66d   :  { %v521_v35 = vpack.c.bf16 %v520_v34, %v519_v33 }
 0x66f   :  { %701 = vmatmul.msk.bf16.vlgmr.msra.gmra.mxu3 %vm556_vm10, %v521_v35 }
 0x6f2   :  { %v569_v36 = vpop.f32.mrf.mxu3 }
 0x6f3   :  { %v570_v37 = vadd.f32 %v733_v8, %v569_v36 }
 0x6f5   :  { %v574_v23 = vadd.f32 %v570_v37, %v479_v4 }
 0x6f7   :  { %v576_v38 = vsel %vm109_vm0, %v574_v23, 0.0 }
 0x6f8   :  { %577 = vadd.xlane.f32.xlu2 %v576_v38 }
 0x6fa   :  { %v571_v21 = vpop.f32.mrf.mxu3 }
 0x6fb   :  { %v572_v24 = vadd.f32 %v733_v8, %v571_v21 }
 0x6fd   :  { %v575_v39 = vadd.f32 %v572_v24, %v480_v18 }
 0x6ff   :  { %v579_v25 = vsel %vm109_vm0, %v575_v39, 0.0 }
 0x700   :  { %580 = vadd.xlane.f32.xlu1 %v579_v25 }
 0x76b   :  { %v578_v40 = vpop.xlane.xlu2 %577 }
 0x76c   :  { %v582_v41 = vmul.f32 %v578_v40, %v1078_v5 }
 0x76e   :  { %v584_v42 = vsub.f32 %v574_v23, %v582_v41 }
 0x770   :  { %v586_v43 = vmul.f32 %v584_v42, %v584_v42 }
 0x772   :  { %v588_v44 = vsel %vm109_vm0, %v586_v43, 0.0 }
 0x773   :  { %v581_v7 = vpop.xlane.xlu1 %580  ;;  %589 = vadd.xlane.f32.xlu1 %v588_v44 }
 0x774   :  { %v583_v45 = vmul.f32 %v581_v7, %v1078_v5 }
 0x776   :  { %v585_v46 = vsub.f32 %v575_v39, %v583_v45 }
 0x778   :  { %v587_v47 = vmul.f32 %v585_v46, %v585_v46 }
 0x77a   :  { %v591_v48 = vsel %vm109_vm0, %v587_v47, 0.0 }
 0x77b   :  { %592 = vadd.xlane.f32.xlu1 %v591_v48 }
 0x7e6   :  { %v590_v49 = vpop.xlane.xlu1 %589 }
 0x7e7   :  { %v594_v50 = vmul.f32 %v590_v49, %v1078_v5 }
 0x7e9   :  { %v596_v51 = vadd.f32 1e-05, %v594_v50 }
 0x7eb   :  { %774 = vrsqrt.f32 %v596_v51  ;;  %vm604_vm12 = vweird.f32 %v596_v51 }
 0x7ee   :  { %v593_v52 = vpop.xlane.xlu1 %592 }
 0x7ef   :  { %v595_v53 = vmul.f32 %v593_v52, %v1078_v5 }
 0x7f1   :  { %v775_v15 = vpop.eup %774  ;;  %v597_v54 = vadd.f32 1e-05, %v595_v53 }
 0x7f2   :  { %v599_v10 = vmul.f32 %v775_v15, %v596_v51  ;;  %vm605_vm11 = vweird.f32 %v775_v15 }
 0x7f3   :  { %776 = vrsqrt.f32 %v597_v54  ;;  %vm606_vm13 = vmor %vm604_vm12, %vm605_vm11  ;;  %vm614_vm15 = vweird.f32 %v597_v54 }
 0x7f4   :  { %v600_v55 = vmul.f32 %v775_v15, %v599_v10 }
 0x7f6   :  { %v601_v56 = vmul.f32 0.5, %v600_v55 }
 0x7f8   :  { %v602_v57 = vsub.f32 1.5, %v601_v56 }
 0x7f9   :  { %v777_v58 = vpop.eup %776 }
 0x7fa   :  { %v603_v59 = vmul.f32 %v775_v15, %v602_v57  ;;  %v609_v60 = vmul.f32 %v777_v58, %v597_v54  ;;  %vm615_vm14 = vweird.f32 %v777_v58 }
 0x7fb   :  { %vm616_vm1 = vmor %vm614_vm15, %vm615_vm14 }
 0x7fc   :  { %v607_v62 = vsel %vm606_vm13, %v775_v15, %v603_v59  ;;  %v610_v63 = vmul.f32 %v777_v58, %v609_v60 }
 0x7fd   :  { %v618_v0 = vmul.f32 %v607_v62, %v584_v42 }
 0x7fe   :  { %v611_v2 = vmul.f32 0.5, %v610_v63 }
 0x7ff   :  { %v622_v5 = vmul.f32 %v734_v61, %v618_v0 }
 0x800   :  { %v612_v3 = vsub.f32 1.5, %v611_v2 }
 0x801   :  { %v626_v6 = vadd.f32 %v735_v1, %v622_v5 }
 0x802   :  { %v613_v9 = vmul.f32 %v777_v58, %v612_v3 }
 0x803   :  { %628 = vst.msk [vmem:[#allocation8] sm:$0xff] %vm109_vm0, %v626_v6 }
 0x804   :  { %v617_v11 = vsel %vm616_vm1, %v777_v58, %v613_v9 }
 0x805   :  { %v619_v12 = vmul.f32 %v617_v11, %v585_v46 }
 0x807   :  { %v623_v13 = vmul.f32 %v734_v61, %v619_v12 }
 0x809   :  { %v627_v14 = vadd.f32 %v735_v1, %v623_v13 }
 0x80b   :  { %629 = vst.msk [vmem:[#allocation8 + $0x8] sm:$0xff] %vm109_vm0, %v627_v14 }
 0x80c   :  { %642 = dma.vmem_to_hbm [thread:$0]  %s635_s5, 256, %s637_s14, [#allocation4], %s885_s21, %s885_s21, %s886_s3  }
 0x80d   :  { %878 = dma.done.wait [#allocation4], 256  }
 0x80e   :  { %879 = vsyncadd [#allocation4], 4294967040 }
 0x80f   :  { %647 = vsyncpa [#allocation3], 1 }
 0x810   :  { %648 = vsyncpa [#allocation6], 1 }
 0x811   :  { %649 = vsyncpa [#allocation4], 1 }

</bundles_post_ra>
